<compile_context>
chip_gen: v6e
topology: v6e:2x2x1
jax: 0.10.0
libtpu: 0.0.40
codegen_flags: <defaults>
</compile_context>

<pallas_src>
import functools

import jax
import jax.numpy as jnp
from jax.experimental import pallas as pl
from jax.experimental.pallas import tpu as pltpu


def _cdiv(a, b):
    return -(-a // b)


def _round_up(a, b):
    return _cdiv(a, b) * b


_SUBLANE = {4: 8, 2: 16, 1: 32}          # dtype bytes -> minimum sublane multiple
_SINGLE_BLOCK_MAX = 1 << 20              # below this a single-step grid is fine


def _vmem_budgets():
    """(block_byte_budget, vmem_limit_bytes) derived from the chip's VMEM size."""
    try:
        vmem = pltpu.get_tpu_info().vmem_capacity_bytes
    except Exception:
        vmem = 64 << 20                  # unknown chip -> assume the smallest (v7x)
    # Peak VMEM ~= 2x block (double-buffered input) + ~2x block of f32 elementwise
    # temps, so keep one block at <= vmem/6 and the scoped limit at <= 3/4 physical.
    block_budget = max(4 << 20, min(16 << 20, vmem // 6))
    vmem_limit = min(vmem * 3 // 4, 64 << 20)
    return block_budget, vmem_limit


def _choose_tiles(rows, hw, dtype_bytes, *, block_byte_budget):
    """Pick (rows_tile, hw_tile) for the (rows, hw) view of x.

    rows_tile is a multiple of 128 whenever more than one row tile is emitted
    (keeps the lane-dense (1, rows_tile) output block legal & unmasked); hw_tile is
    a multiple of 128 whenever more than one hw tile is emitted (lets the kernel
    fold lanes with pure VPU adds).
    """
    sub = _SUBLANE.get(dtype_bytes, 8)
    rows_al = _round_up(rows, sub)
    # Budget against the in-VMEM footprint: lanes pad to 128 and math runs in f32.
    elem_bytes = max(dtype_bytes, 4)
    vrow_bytes = _round_up(hw, 128) * elem_bytes
    total_bytes = rows_al * vrow_bytes

    # --- tiny problem, or too few rows to split the row axis legally -------------
    if total_bytes <= _SINGLE_BLOCK_MAX or rows_al < 256:
        if total_bytes <= min(block_byte_budget, 2 * _SINGLE_BLOCK_MAX):
            return rows_al, hw                               # one block, one step
        # Rows can't be split into 128-multiples -> tile hw instead (pipelining).
        target = min(block_byte_budget, max(_SINGLE_BLOCK_MAX, total_bytes // 4))
        hw_tile = (target // (rows_al * elem_bytes)) // 128 * 128
        hw_tile = max(128, hw_tile)
        return rows_al, min(hw_tile, hw)

    # --- canonical GeM regime: full hw per block, split the row axis -------------
    cap_rows = block_byte_budget // vrow_bytes
    if cap_rows >= 128:
        rt_cap = min((cap_rows // 128) * 128, _round_up(rows_al, 128))
        n = max(_cdiv(rows_al, rt_cap),                      # tiles forced by budget
                4 if total_bytes >= (8 << 20) else 2)        # pipelining / megacore
        if n > 1 and n % 2:
            n += 1                                           # even split for 2-TC chips
        n = min(n, _cdiv(rows_al, 128))
        rows_tile = min(_round_up(_cdiv(rows_al, n), 128), rt_cap)
        return max(rows_tile, 128), hw

    # --- hw is huge relative to the budget: tile the reduction axis too ----------
    rows_tile = 256
    hw_tile = (block_byte_budget // (rows_tile * elem_bytes)) // 128 * 128
    hw_tile = max(128, hw_tile)
    return rows_tile, min(hw_tile, hw)


def _pow_pos(x, p, low_precision=False):
    """x ** p for x > 0 via exp(p * log(x)): exactly 2 EUP ops + 1 VPU mul."""
    if low_precision:
        # bf16 EUP path (v6e/v7x only; ~p*2^-8 relative error) -- off by default.
        lg = jnp.log(x.astype(jnp.bfloat16)).astype(jnp.float32) * p
        return jnp.exp(lg.astype(jnp.bfloat16)).astype(jnp.float32)
    return jnp.exp(jnp.log(x) * p)


def _apply_p(xc, p, static_p, low_precision):
    """clamp(x)**p; a static integer p lowers to pure VPU multiplies (no EUP)."""
    if static_p is not None:
        sp = float(static_p)
        if sp == int(sp) and 1.0 <= sp <= 8.0:
            out = xc
            for _ in range(int(sp) - 1):
                out = out * xc
            return out
        return _pow_pos(xc, sp, low_precision)
    return _pow_pos(xc, p, low_precision)


def _gem_kernel_single(p_ref, x_ref, o_ref, *, eps, inv_hw, static_p, low_precision):
    # p_ref : SMEM (1,)            -- learned GeM exponent (ignored when static_p)
    # x_ref : VMEM (rows_tile, hw) -- full feature map per row (no hw padding lanes)
    # o_ref : VMEM (1, rows_tile)  -- lane-dense output slab
    if static_p is None:
        p = p_ref[0]
        inv_p = 1.0 / p
    else:
        p = float(static_p)
        inv_p = 1.0 / p
    xc = jnp.maximum(x_ref[...].astype(jnp.float32), eps)
    xp = _apply_p(xc, p, static_p, low_precision)
    mean = jnp.sum(xp, axis=-1, keepdims=True) * inv_hw        # (rows_tile, 1)
    out = _pow_pos(mean, inv_p)
    # Move per-row results from sublanes onto the lane axis -> dense stores/DMA.
    o_ref[...] = jnp.transpose(out).astype(o_ref.dtype)


def _gem_kernel_accum(p_ref, x_ref, o_ref, acc_ref, *, eps, hw, hw_tile, inv_hw,
                      static_p, low_precision):
    # 2-D grid (row tiles, hw tiles).  acc_ref: (rows_tile, 128) f32 lane-parallel
    # partial sums -> per-step reduce is VPU-only; the single cross-lane XLU reduce
    # happens once in the finalize branch.
    k = pl.program_id(1)
    last = pl.num_programs(1) - 1

    @pl.when(k == 0)
    def _init():
        acc_ref[...] = jnp.zeros_like(acc_ref)

    if static_p is None:
        p = p_ref[0]
        inv_p = 1.0 / p
    else:
        p = float(static_p)
        inv_p = 1.0 / p

    xc = jnp.maximum(x_ref[...].astype(jnp.float32), eps)
    xp = _apply_p(xc, p, static_p, low_precision)

    nchunk = hw_tile // 128

    def _fold_into_acc(v):                 # (rows_tile, hw_tile) -> acc += (rows_tile, 128)
        part = v[:, 0:128]
        for c in range(1, nchunk):
            part = part + v[:, c * 128:(c + 1) * 128]
        acc_ref[...] += part

    if hw % hw_tile == 0:
        _fold_into_acc(xp)
    else:
        # Only the last hw tile has out-of-range lanes; pay the mask only there.
        @pl.when(k < last)
        def _acc_full():
            _fold_into_acc(xp)

        @pl.when(k == last)
        def _acc_masked():
            lane = jax.lax.broadcasted_iota(jnp.int32, xp.shape, 1)
            _fold_into_acc(jnp.where(k * hw_tile + lane < hw, xp, 0.0))

    @pl.when(k == last)
    def _finalize():
        total = jnp.sum(acc_ref[...], axis=-1, keepdims=True)  # one XLU reduce
        mean = total * inv_hw
        out = _pow_pos(mean, inv_p)
        o_ref[...] = jnp.transpose(out).astype(o_ref.dtype)


def gem_pool(x, p, eps=1e-6, *, static_p=None, low_precision_pow=False,
             block_byte_budget=None, vmem_limit_bytes=None):
    """GeM pooling.  x: (N, C, H, W) floats; p: (1,) array or a Python scalar
    (scalar -> static fast path).  Returns (N, C, 1, 1)."""
    N, C, H, W = x.shape
    rows, hw = N * C, H * W
    x2d = x.reshape(rows, hw)
    dtype_bytes = jnp.dtype(x.dtype).itemsize

    default_budget, default_limit = _vmem_budgets()
    if block_byte_budget is None:
        block_byte_budget = default_budget
    if vmem_limit_bytes is None:
        vmem_limit_bytes = default_limit

    if isinstance(p, (int, float)) and static_p is None:
        static_p = float(p)
    p_arr = (jnp.full((1,), static_p, jnp.float32) if static_p is not None
             else jnp.asarray(p, jnp.float32).reshape(1))

    rows_tile, hw_tile = _choose_tiles(rows, hw, dtype_bytes,
                                       block_byte_budget=block_byte_budget)
    n_row_tiles = _cdiv(rows, rows_tile)
    n_hw_tiles = _cdiv(hw, hw_tile)
    out_cols = n_row_tiles * rows_tile       # may exceed rows; tail sliced off below

    static_int_p = (static_p is not None and float(static_p) == int(static_p)
                    and 1 <= int(static_p) <= 8)
    cost = pl.CostEstimate(
        flops=5 * rows * hw,
        transcendentals=0 if static_int_p else 2 * rows * hw,  # pow ~ exp(p*log(x))
        bytes_accessed=rows * hw * dtype_bytes + rows * dtype_bytes)

    if n_hw_tiles == 1:
        kernel = functools.partial(
            _gem_kernel_single, eps=float(eps), inv_hw=1.0 / hw,
            static_p=static_p, low_precision=low_precision_pow)
        out_row = pl.pallas_call(
            kernel,
            out_shape=jax.ShapeDtypeStruct((1, out_cols), x.dtype),
            grid=(n_row_tiles,),
            in_specs=[
                pl.BlockSpec(memory_space=pltpu.SMEM),                  # p (scalar)
                pl.BlockSpec((rows_tile, hw), lambda i: (i, 0)),        # x tile
            ],
            out_specs=pl.BlockSpec((1, rows_tile), lambda i: (0, i)),
            compiler_params=pltpu.CompilerParams(
                dimension_semantics=("parallel",),
                vmem_limit_bytes=vmem_limit_bytes),
            cost_estimate=cost,
        )(p_arr, x2d)
    else:
        kernel = functools.partial(
            _gem_kernel_accum, eps=float(eps), hw=hw, hw_tile=hw_tile,
            inv_hw=1.0 / hw, static_p=static_p, low_precision=low_precision_pow)
        out_row = pl.pallas_call(
            kernel,
            out_shape=jax.ShapeDtypeStruct((1, out_cols), x.dtype),
            grid=(n_row_tiles, n_hw_tiles),
            in_specs=[
                pl.BlockSpec(memory_space=pltpu.SMEM),                  # p (scalar)
                pl.BlockSpec((rows_tile, hw_tile), lambda i, k: (i, k)),
            ],
            out_specs=pl.BlockSpec((1, rows_tile), lambda i, k: (0, i)),  # resident over k
            scratch_shapes=[pltpu.VMEM((rows_tile, 128), jnp.float32)],
            compiler_params=pltpu.CompilerParams(
                dimension_semantics=("parallel", "arbitrary"),
                vmem_limit_bytes=vmem_limit_bytes),
            cost_estimate=cost,
        )(p_arr, x2d)

    return out_row[0, :rows].reshape(N, C, 1, 1)


def gem_reference(x, p, eps=1e-6):
    pv = p if isinstance(p, (int, float)) else p[0]
    xp = jnp.maximum(x, eps) ** pv
    return jnp.mean(xp, axis=(-2, -1), keepdims=True) ** (1.0 / pv)


if __name__ == "__main__":
    keys = jax.random.split(jax.random.PRNGKey(0), 3)
    # module __init__: p = Parameter(ones(1) * 3), eps = 1e-6
    p_param = jnp.ones((1,), jnp.float32) * 3.0
    eps = 1e-6

    # 1) small NCHW input consistent with the module's forward (single-block path).
    x = jax.random.normal(keys[0], (2, 4, 16, 16), jnp.float32)
    out = jax.block_until_ready(gem_pool(x, p_param, eps=eps))
    ref = gem_reference(x, p_param, eps=eps)
    assert out.shape == (2, 4, 1, 1)
    assert jnp.allclose(out, ref, rtol=1e-4, atol=1e-6)

    # 2) multi-row-tile path (small byte budget forces four 512-row tiles).
    x2 = jax.random.normal(keys[1], (2, 1024, 16, 16), jnp.float32)
    out2 = jax.block_until_ready(gem_pool(x2, p_param, eps=eps,
                                          block_byte_budget=512 << 10))
    assert jnp.allclose(out2, gem_reference(x2, p_param, eps=eps),
                        rtol=1e-4, atol=1e-6)

    # 3) hw-tiled accumulator path with ragged hw (exercises last-tile masking).
    x3 = jax.random.normal(keys[2], (2, 64, 30, 30), jnp.float32)
    out3 = jax.block_until_ready(gem_pool(x3, p_param, eps=eps,
                                          block_byte_budget=128 << 10))
    assert jnp.allclose(out3, gem_reference(x3, p_param, eps=eps),
                        rtol=1e-4, atol=1e-6)

    # 4) static-p fast path (frozen p=3 -> pure VPU multiplies, no EUP).
    out4 = jax.block_until_ready(gem_pool(x, 3.0, eps=eps))
    assert jnp.allclose(out4, gem_reference(x, 3.0, eps=eps), rtol=1e-4, atol=1e-6)

    print("KERNEL_OK")
</pallas_src>

<mosaic_0001>
module attributes {stable_mosaic.version = 11 : i64} {
  func.func @_gem_kernel_single(%arg0: i32, %arg1: memref<1xf32, #tpu.memory_space<smem>>, %arg2: memref<8x256xf32, #tpu.memory_space<vmem>>, %arg3: memref<1x8xf32, #tpu.memory_space<vmem>>) attributes {dimension_semantics = [#tpu.dimension_semantics<parallel>], iteration_bounds = array<i64: 1>, scalar_prefetch = 0 : i64, scratch_operands = 0 : i64, tpu.core_type = #tpu.core_type<tc>, window_params = [{transform_indices = @transform_0, window_bounds = array<i64: 1>}, {transform_indices = @transform_1, window_bounds = array<i64: 8, 256>}, {transform_indices = @transform_2, window_bounds = array<i64: 1, 8>}]} {
    %c0 = arith.constant 0 : index
    %0 = memref.load %arg1[%c0] : memref<1xf32, #tpu.memory_space<smem>>
    %cst = arith.constant 1.000000e+00 : f32
    %1 = arith.divf %cst, %0 : f32
    %c0_0 = arith.constant 0 : index
    %c0_1 = arith.constant 0 : index
    %2 = vector.load %arg2[%c0_0, %c0_1] : memref<8x256xf32, #tpu.memory_space<vmem>>, vector<8x256xf32>
    %cst_2 = arith.constant 9.99999997E-7 : f32
    %3 = vector.broadcast %cst_2 : f32 to vector<8x256xf32>
    %4 = arith.maximumf %2, %3 : vector<8x256xf32>
    %5 = math.log %4 : vector<8x256xf32>
    %6 = vector.broadcast %0 : f32 to vector<8x256xf32>
    %7 = arith.mulf %5, %6 : vector<8x256xf32>
    %8 = math.exp %7 : vector<8x256xf32>
    %cst_3 = arith.constant dense<0.000000e+00> : vector<8xf32>
    %9 = vector.multi_reduction <add>, %8, %cst_3 [1] : vector<8x256xf32> to vector<8xf32>
    %10 = vector.shape_cast %9 : vector<8xf32> to vector<8x1xf32>
    %cst_4 = arith.constant 3.906250e-03 : f32
    %11 = vector.broadcast %cst_4 : f32 to vector<8x1xf32>
    %12 = arith.mulf %10, %11 : vector<8x1xf32>
    %13 = math.log %12 : vector<8x1xf32>
    %14 = vector.broadcast %1 : f32 to vector<8x1xf32>
    %15 = arith.mulf %13, %14 : vector<8x1xf32>
    %16 = math.exp %15 : vector<8x1xf32>
    %17 = tpu.transpose %16, [1, 0] : vector<8x1xf32> -> vector<1x8xf32>
    %c0_5 = arith.constant 0 : index
    %c0_6 = arith.constant 0 : index
    %18 = vector.load %arg3[%c0_5, %c0_6] : memref<1x8xf32, #tpu.memory_space<vmem>>, vector<1x8xf32>
    tpu.vector_store %arg3[%c0_5, %c0_6], %17 {strides = array<i32>} : memref<1x8xf32, #tpu.memory_space<vmem>>, vector<1x8xf32>,
    return
  }
  func.func @transform_0(%arg0: i32) -> i32 {
    %c0_i32 = arith.constant 0 : i32
    %c0_i32_0 = arith.constant 0 : i32
    return %c0_i32 : i32
  }
  func.func @transform_1(%arg0: i32) -> (i32, i32) {
    %c0_i32 = arith.constant 0 : i32
    %c0_i32_0 = arith.constant 0 : i32
    return %arg0, %c0_i32 : i32, i32
  }
  func.func @transform_2(%arg0: i32) -> (i32, i32) {
    %c0_i32 = arith.constant 0 : i32
    %c0_i32_0 = arith.constant 0 : i32
    return %c0_i32, %arg0 : i32, i32
  }
}

</mosaic_0001>

<bundles_post_ra>
// kernel: tpu_custom_call.1
= control target key start
LH: loop header
LB: loop body
LE: loop exit
PB: predicated region body
PF: predicated region fallthrough
CT: control target
= control target key end

     0   :  { %8 = vsyncpa [#allocation4], 0  ;;  %s192_s0 = inlined_call_operand.<no memory space> [shape: f32[1], index: 0, kind: input, shape index: {}]   ;;  %s193_s1 = inlined_call_operand.hbm [shape: f32[8,256], index: 1, kind: input, shape index: {}]   ;;  %s194_s2 = inlined_call_operand.hbm [shape: f32[1,8], index: 2, kind: output, shape index: {}]  }
   0x1   :  { %9 = vsyncpa [#allocation5], 0  ;;  %s166_s9 = smov [#allocation3]  }
   0x2   :  { %s18_s10 = sshll.u32 %s166_s9, 4  ;;  %s19_s10 = int_to_ptr.vmem [resolvable:$true] %s18_s10 }
   0x3   :  { %s130_s11 = scalar_lea.vmem %s19_s10, 256  ;;  %p135_p1 = scmp.lt.s32.totalorder %s19_s10, %s19_s10 }
   0x4   :  { %p131_p0 = scmp.ne.s32.totalorder %s19_s10, %s130_s11  ;;  %p136_p2 = scmp.lt.s32.totalorder %s130_s11, %s130_s11 }
   0x6   :  { %p137_p3 = por %p136_p2, %p135_p1 }
   0x8   :  { %p138_p4 = pnand %p137_p3, %p131_p0 }
   0xa   :  { %141 = shalt.err (!%p138_p4)
}
   0xb   :  { %21 = dma.hbm_to_vmem [thread:$0]  %s193_s1, 256, %s19_s10, [#allocation4]  }
   0xc   :  { %162 = dma.done.wait [#allocation4], 256  }
   0xd   :  { %163 = vsyncadd [#allocation4], 4294967040  ;;  %v26_v0 = vstv %s192_s0  ;;  %v29_v1 = vld [vmem:[#allocation3] sm:$0xff]  ;;  %v30_v2 = vld [vmem:[#allocation3 + $0x8] sm:$0xff]  ;;  %s167_s1 = smov [#allocation6]   ;;  %vm86_vm0 = vcmask 57344  }
   0xe   :  { %108 = vrcp.f32 %v26_v0  ;;  %v31_v3 = vmax.f32 %v29_v1, 1e-06  ;;  %v32_v4 = vmax.f32 %v30_v2, 1e-06  ;;  %s94_s16 = sshll.u32 %s167_s1, 4  ;;  %s95_s16 = int_to_ptr.vmem [resolvable:$true] %s94_s16 }
   0xf   :  { %s142_s17 = scalar_lea.vmem %s95_s16, 16  ;;  %s146_s18 = scalar_lea.vmem %s95_s16, 32 }
  0x10   :  { %110 = vlog2.f32 %v31_v3  ;;  %p143_p5 = scmp.ne.s32.totalorder %s95_s16, %s142_s17  ;;  %p147_p6 = scmp.lt.s32.totalorder %s95_s16, %s95_s16 }
  0x11   :  { %112 = vlog2.f32 %v32_v4  ;;  %p148_p7 = scmp.lt.s32.totalorder %s146_s18, %s142_s17 }
  0x13   :  { %p149_p8 = por %p148_p7, %p147_p6 }
  0x15   :  { %p150_p9 = pnand %p149_p8, %p143_p5 }
  0x1b   :  { %v109_v5 = vpop.eup %108 }
  0x1c   :  { %103 = vpush %v109_v5 }
  0x1d   :  { %v111_v6 = vpop.eup %110 }
  0x1e   :  { %v113_v7 = vpop.eup %112  ;;  %v34_v8 = vmul.f32 0.6931472, %v111_v6 }
  0x1f   :  { %v36_v9 = vmul.f32 0.6931472, %v113_v7 }
  0x20   :  { %v38_v10 = vmul.f32 %v34_v8, %v26_v0 }
  0x21   :  { %v39_v11 = vmul.f32 %v36_v9, %v26_v0 }
  0x22   :  { %v40_v12 = vmul.f32 1.442695, %v38_v10 }
  0x23   :  { %v42_v13 = vmul.f32 1.442695, %v39_v11 }
  0x24   :  { %114 = vpow2.f32 %v40_v12 }
  0x25   :  { %116 = vpow2.f32 %v42_v13 }
  0x31   :  { %v115_v14 = vpop.eup %114 }
  0x32   :  { %v117_v15 = vpop.eup %116 }
  0x33   :  { %v44_v16 = vadd.f32 %v117_v15, %v115_v14 }
  0x35   :  { %45 = vadd.xlane.f32.xlu0 %v44_v16 }
  0x4d   :  { %s104_s0 = spop %103 }
  0x4e   :  { %v50_v20 = vstv %s104_s0 }
  0xbe   :  { %v46_v17 = vpop.xlane.xlu0 %45 }
  0xbf   :  { %v47_v18 = vmul.f32 0.00390625, %v46_v17 }
  0xc1   :  { %118 = vlog2.f32 %v47_v18 }
  0xce   :  { %v119_v19 = vpop.eup %118 }
  0xcf   :  { %v49_v21 = vmul.f32 0.6931472, %v119_v19 }
  0xd1   :  { %v51_v22 = vmul.f32 %v50_v20, %v49_v21 }
  0xd3   :  { %v52_v23 = vmul.f32 1.442695, %v51_v22 }
  0xd5   :  { %120 = vpow2.f32 %v52_v23 }
  0xe2   :  { %v121_v24 = vpop.eup %120 }
  0xe3   :  { %54 = vxpose.xlu0.b32.start.end [1/1] (short) (narrow) %v121_v24, 8 }
 0x15f   :  { %v70_v25 = vpop.trf.xlu0 }
 0x160   :  { %87 = vst.msk [vmem:[#allocation6] sm:$0x1] %vm86_vm0, %v70_v25 }
 0x161   :  { %153 = shalt.err (!%p150_p9)
}
 0x162   :  { %97 = dma.vmem_to_hbm [thread:$0]  %s95_s16, 16, %s194_s2, [#allocation5]  }
 0x163   :  { %164 = dma.done.wait [#allocation5], 16  }
 0x164   :  { %165 = vsyncadd [#allocation5], 4294967280 }
 0x165   :  { %101 = vsyncpa [#allocation4], 1 }
 0x166   :  { %102 = vsyncpa [#allocation5], 1 }

</bundles_post_ra>
